<compile_context>
chip_gen: v7x
topology: tpu7x:2x2x1
jax: 0.10.0
libtpu: 0.0.40
codegen_flags: <defaults>
</compile_context>

<pallas_src>
import math

import jax
import jax.numpy as jnp
import numpy as np
from jax.experimental import pallas as pl
from jax.experimental.pallas import tpu as pltpu


def _film_fma_kernel(g_ref, b_ref, x_ref, o_ref):
    # g_ref, b_ref : (1, C, 1, step)    f32 FiLM scale/shift (period-F pattern, width=step)
    # x_ref, o_ref : (1, C, rows, step) lane-dense slab of the (T*F)-flattened input
    x = x_ref[...].astype(jnp.float32)
    # gamma/beta broadcast along the row (sublane) axis -- cheap sublane broadcast.
    o_ref[...] = (x * g_ref[...] + b_ref[...]).astype(o_ref.dtype)


def _choose_layout(T, F, C, dtype_bytes, max_block_bytes):
    """Pick (step, rows) so that x can be viewed as (B, C, nS, step), nS = T*F // step,
    and blocked (1, C, rows, step).

    Invariants:
      * step is a multiple of F and divides T*F exactly  -> the period-F gamma/beta
        pattern is identical on every row (phase never drifts across blocks).
      * step is a multiple of 128 whenever the shape allows -> fully lane-dense blocks.
      * rows is a multiple of the sublane quantum (8 f32 / 16 bf16) or equals nS.
      * C * rows * step * dtype_bytes respects max_block_bytes (cap-aware fallback).
    """
    L = T * F
    # Largest row length such that a minimal (8-row) block still fits the cap.
    max_step = max(F, max_block_bytes // (8 * dtype_bytes * max(C, 1)))

    need = 128 // math.gcd(F, 128)          # smallest d with (F*d) % 128 == 0
    if T % need == 0 and F * need <= max_step:
        step = F * need                      # lane-dense (multiple of 128)
    else:
        # Fallback: smallest divisor d of T giving >= 128 lanes (bounded by the cap);
        # worst case step = F (correct, partially masked lanes).
        step = F
        d = 1
        while d <= T:
            if T % d == 0 and F * d <= max_step:
                step = F * d
                if F * d >= 128:
                    break
            d += 1
    nS = L // step

    sub_quant = max(8, 32 // dtype_bytes)    # 8 (f32), 16 (bf16), 32 (int8/fp8)
    if C * nS * step * dtype_bytes <= max_block_bytes:
        rows = nS                            # everything along s in one block (legal: full dim)
    else:
        max_rows = max(1, max_block_bytes // (C * step * dtype_bytes))
        rows = min(nS, max(sub_quant, (max_rows // sub_quant) * sub_quant))
    return step, rows


def film1d_forward(x, cond, wg, bg, wb, bb, *, max_block_bytes=4 << 20):
    """FiLM1DLayer forward.
    x: [B, C, T, F], cond: [B, D],
    wg/wb: [D, C*F] (Conv1d k=1 weights, stored transposed), bg/bb: [C*F].
    Returns [B, C, T, F]."""
    B, C, T, F = x.shape
    CF = C * F
    L = T * F
    dtype_bytes = jnp.dtype(x.dtype).itemsize

    # ---- gamma/beta projection: one tiny fused XLA matmul (hoisted out of the kernel) ----
    w_cat = jnp.concatenate([wg, wb], axis=1)                  # (D, 2*CF)
    b_cat = jnp.concatenate([bg, bb], axis=0)                  # (2*CF,)
    gb = jnp.dot(cond.astype(jnp.float32), w_cat.astype(jnp.float32),
                 precision=jax.lax.Precision.HIGHEST,
                 preferred_element_type=jnp.float32) + b_cat.astype(jnp.float32)
    g = gb[:, :CF].reshape(B, C, F)                            # gamma, (B, C, F)
    bt = gb[:, CF:].reshape(B, C, F)                           # beta,  (B, C, F)

    # ---- layout: (B, C, T, F) -> (B, C, nS, step) (free trailing-dim reshape) ----
    step, rows = _choose_layout(T, F, C, dtype_bytes, max_block_bytes)
    nS = L // step
    rep = step // F

    # Compact FiLM params: only the minimal period-aligned width `step` is materialized
    # (tiny: B*C*step elements), NOT the full block width.  DMA'd once per batch.
    g4 = jnp.tile(g, (1, 1, rep)).reshape(B, C, 1, step)
    b4 = jnp.tile(bt, (1, 1, rep)).reshape(B, C, 1, step)
    x4 = x.reshape(B, C, nS, step)

    grid = (B, pl.cdiv(nS, rows))            # ragged tail handled by Pallas masking

    # VMEM budget derived from the actual blocks (portable across v5e/v6e/v7x).
    x_blk = C * rows * step * dtype_bytes
    g_blk = C * 8 * step * 4                 # sublane-padded f32 gamma/beta block
    pipeline_bytes = 2 * 2 * x_blk + 2 * 2 * g_blk   # double-buffered x,out + g,b
    vmem_limit = int(max(32 << 20, pipeline_bytes + (8 << 20)))

    out4 = pl.pallas_call(
        _film_fma_kernel,
        out_shape=jax.ShapeDtypeStruct((B, C, nS, step), x.dtype),
        grid_spec=pltpu.PrefetchScalarGridSpec(
            num_scalar_prefetch=0,
            grid=grid,
            in_specs=[
                pl.BlockSpec((1, C, 1, step), lambda b, s: (b, 0, 0, 0)),     # gamma (const over s)
                pl.BlockSpec((1, C, 1, step), lambda b, s: (b, 0, 0, 0)),     # beta  (const over s)
                pl.BlockSpec((1, C, rows, step), lambda b, s: (b, 0, s, 0)),  # x slab
            ],
            out_specs=pl.BlockSpec((1, C, rows, step), lambda b, s: (b, 0, s, 0)),
        ),
        compiler_params=pltpu.CompilerParams(
            dimension_semantics=("parallel", "parallel"),   # both TCs get work on v7x even if B==1
            vmem_limit_bytes=vmem_limit,
        ),
        cost_estimate=pl.CostEstimate(
            flops=2 * B * C * L,
            transcendentals=0,
            bytes_accessed=2 * B * C * L * dtype_bytes + 4 * B * C * step * 4,
        ),
    )(g4, b4, x4)

    return out4.reshape(B, C, T, F)


if __name__ == "__main__":
    # Small shapes consistent with the module's forward
    B, C, T, F = 2, 4, 8, 32          # batch, channels_dim, T, feature_size
    D = 8                             # input_dim (condition dim)
    CF = C * F

    key = jax.random.PRNGKey(0)
    k_x, k_y, k_wg, k_bg, k_wb, k_bb = jax.random.split(key, 6)

    x = jax.random.normal(k_x, (B, C, T, F), dtype=jnp.float32)
    cond = jax.random.normal(k_y, (B, D), dtype=jnp.float32)

    # Conv1d kernel_size=1 -> weight [out, in]; stored transposed as [in, out]
    wg = jax.random.normal(k_wg, (D, CF), dtype=jnp.float32) * (1.0 / np.sqrt(D))
    bg = jax.random.normal(k_bg, (CF,), dtype=jnp.float32) * 0.1
    wb = jax.random.normal(k_wb, (D, CF), dtype=jnp.float32) * (1.0 / np.sqrt(D))
    bb = jax.random.normal(k_bb, (CF,), dtype=jnp.float32) * 0.1

    out = film1d_forward(x, cond, wg, bg, wb, bb)
    out = jax.block_until_ready(out)

    # Pure-JAX reference (same semantics as the torch module)
    g_flat = jnp.dot(cond, wg, precision=jax.lax.Precision.HIGHEST) + bg
    b_flat = jnp.dot(cond, wb, precision=jax.lax.Precision.HIGHEST) + bb
    g_ref = g_flat.reshape(B, C, F, 1).transpose(0, 1, 3, 2)    # (B, C, 1, F)
    b_ref = b_flat.reshape(B, C, F, 1).transpose(0, 1, 3, 2)
    ref = x * g_ref + b_ref
    np.testing.assert_allclose(np.asarray(out), np.asarray(ref), rtol=1e-5, atol=1e-5)

    print("KERNEL_OK")
</pallas_src>

<mosaic_0001>
module attributes {stable_mosaic.version = 11 : i64} {
  func.func @_film_fma_kernel(%arg0: i32, %arg1: i32, %arg2: memref<1x4x1x128xf32, #tpu.memory_space<vmem>>, %arg3: memref<1x4x1x128xf32, #tpu.memory_space<vmem>>, %arg4: memref<1x4x2x128xf32, #tpu.memory_space<vmem>>, %arg5: memref<1x4x2x128xf32, #tpu.memory_space<vmem>>) attributes {dimension_semantics = [#tpu.dimension_semantics<parallel>, #tpu.dimension_semantics<parallel>], iteration_bounds = array<i64: 2, 1>, scalar_prefetch = 0 : i64, scratch_operands = 0 : i64, tpu.core_type = #tpu.core_type<tc>, window_params = [{transform_indices = @transform_0, window_bounds = array<i64: 1, 4, 1, 128>}, {transform_indices = @transform_1, window_bounds = array<i64: 1, 4, 1, 128>}, {transform_indices = @transform_2, window_bounds = array<i64: 1, 4, 2, 128>}, {transform_indices = @transform_3, window_bounds = array<i64: 1, 4, 2, 128>}]} {
    %c0 = arith.constant 0 : index
    %c0_0 = arith.constant 0 : index
    %c0_1 = arith.constant 0 : index
    %c0_2 = arith.constant 0 : index
    %0 = vector.load %arg4[%c0, %c0_0, %c0_1, %c0_2] : memref<1x4x2x128xf32, #tpu.memory_space<vmem>>, vector<1x4x2x128xf32>
    %c0_3 = arith.constant 0 : index
    %c0_4 = arith.constant 0 : index
    %c0_5 = arith.constant 0 : index
    %c0_6 = arith.constant 0 : index
    %1 = vector.load %arg2[%c0_3, %c0_4, %c0_5, %c0_6] : memref<1x4x1x128xf32, #tpu.memory_space<vmem>>, vector<1x4x1x128xf32>
    %2 = vector.broadcast %1 : vector<1x4x1x128xf32> to vector<1x4x2x128xf32>
    %3 = arith.mulf %0, %2 : vector<1x4x2x128xf32>
    %c0_7 = arith.constant 0 : index
    %c0_8 = arith.constant 0 : index
    %c0_9 = arith.constant 0 : index
    %c0_10 = arith.constant 0 : index
    %4 = vector.load %arg3[%c0_7, %c0_8, %c0_9, %c0_10] : memref<1x4x1x128xf32, #tpu.memory_space<vmem>>, vector<1x4x1x128xf32>
    %5 = vector.broadcast %4 : vector<1x4x1x128xf32> to vector<1x4x2x128xf32>
    %6 = arith.addf %3, %5 : vector<1x4x2x128xf32>
    %c0_11 = arith.constant 0 : index
    %c0_12 = arith.constant 0 : index
    %c0_13 = arith.constant 0 : index
    %c0_14 = arith.constant 0 : index
    %7 = vector.load %arg5[%c0_11, %c0_12, %c0_13, %c0_14] : memref<1x4x2x128xf32, #tpu.memory_space<vmem>>, vector<1x4x2x128xf32>
    tpu.vector_store %arg5[%c0_11, %c0_12, %c0_13, %c0_14], %6 {strides = array<i32>} : memref<1x4x2x128xf32, #tpu.memory_space<vmem>>, vector<1x4x2x128xf32>,
    return
  }
  func.func @transform_0(%arg0: i32, %arg1: i32) -> (i32, i32, i32, i32) {
    %c0_i32 = arith.constant 0 : i32
    %c0_i32_0 = arith.constant 0 : i32
    %c0_i32_1 = arith.constant 0 : i32
    %c0_i32_2 = arith.constant 0 : i32
    return %arg0, %c0_i32, %c0_i32_0, %c0_i32_1 : i32, i32, i32, i32
  }
  func.func @transform_1(%arg0: i32, %arg1: i32) -> (i32, i32, i32, i32) {
    %c0_i32 = arith.constant 0 : i32
    %c0_i32_0 = arith.constant 0 : i32
    %c0_i32_1 = arith.constant 0 : i32
    %c0_i32_2 = arith.constant 0 : i32
    return %arg0, %c0_i32, %c0_i32_0, %c0_i32_1 : i32, i32, i32, i32
  }
  func.func @transform_2(%arg0: i32, %arg1: i32) -> (i32, i32, i32, i32) {
    %c0_i32 = arith.constant 0 : i32
    %c0_i32_0 = arith.constant 0 : i32
    %c0_i32_1 = arith.constant 0 : i32
    return %arg0, %c0_i32, %arg1, %c0_i32_0 : i32, i32, i32, i32
  }
  func.func @transform_3(%arg0: i32, %arg1: i32) -> (i32, i32, i32, i32) {
    %c0_i32 = arith.constant 0 : i32
    %c0_i32_0 = arith.constant 0 : i32
    %c0_i32_1 = arith.constant 0 : i32
    return %arg0, %c0_i32, %arg1, %c0_i32_0 : i32, i32, i32, i32
  }
}

</mosaic_0001>

<bundles_post_ra>
// kernel: tpu_custom_call.1
= control target key start
LH: loop header
LB: loop body
LE: loop exit
PB: predicated region body
PF: predicated region fallthrough
CT: control target
= control target key end

     0   :  { %s1096_s0 = inlined_call_operand.hbm [shape: f32[2,4,1,128], index: 0, kind: input, shape index: {}]   ;;  %s1097_s1 = inlined_call_operand.hbm [shape: f32[2,4,1,128], index: 1, kind: input, shape index: {}]   ;;  %s1098_s2 = inlined_call_operand.hbm [shape: f32[2,4,2,128], index: 2, kind: input, shape index: {}]   ;;  %s1099_s3 = inlined_call_operand.hbm [shape: f32[2,4,2,128], index: 3, kind: output, shape index: {}]  }
   0x1   :  { %1105 = sst [smem:[#allocation13_spill]] %s1096_s0 }
   0x2   :  { %1106 = sst [smem:[#allocation14_spill]] %s1097_s1 }
   0x3   :  { %8 = vsyncpa [#allocation3], 0 }
   0x4   :  { %10 = vsyncpa [#allocation3 + $0x1], 0 }
   0x5   :  { %11 = vsyncpa [#allocation6], 0 }
   0x6   :  { %13 = vsyncpa [#allocation6 + $0x1], 0 }
   0x7   :  { %14 = vsyncpa [#allocation4], 0 }
   0x8   :  { %16 = vsyncpa [#allocation4 + $0x1], 0  ;;  %s819_s12 = smov 0   ;;  %s821_s13 = smov 0  }
   0x9   :  { %s823_s14 = smov 0   ;;  %s825_s15 = smov 0  }
   0xa   :  { %s827_s16 = smov 0   ;;  %s829_s17 = smov 0  }
   0xb LB: > { %s850_s18 = sadd.s32 4294967295, %s787_s17   ;;  %s499_s19 = sadd.s32 4294967294, %s787_s17   ;;  %s787_s17 = sphi %s829_s17, %s22_s17   ;;  %s783_s16 = sphi %s827_s16, %s1131_s16   ;;  %s779_s15 = sphi %s825_s15, %s1130_s15   ;;  %s775_s14 = sphi %s823_s14, %s1129_s14   ;;  %s771_s13 = sphi %s821_s13, %s1128_s13   ;;  %s767_s12 = sphi %s819_s12, %s1127_s12  }
   0xc   : > { %s34_s20 = sadd.s32 1, %s783_s16  ;;  %s41_s21 = sadd.s32 1, %s775_s14 }
   0xd   : > { %p36_p0 = scmp.ge.s32.totalorder %s34_s20, 2  ;;  %p48_p1 = scmp.ne.s32.totalorder %s775_s14, %s771_s13 }
   0xe   : > { %p49_p2 = scmp.eq.s32.totalorder %s787_s17, 0  ;;  %p54_p3 = scmp.ne.s32.totalorder %s771_s13, %s767_s12 }
   0xf   : > { %s1133_s20 = smov (%p36_p0, %s34_s20), 0  ;;  %p55_p5 = scmp.eq.s32.totalorder %s850_s18, 0 }
  0x10   : > { %1107 = sst [smem:[#allocation12_spill]] %s1133_s20  ;;  %p862_p4 = por %p49_p2, %p48_p1 }
  0x11   : > { %s38_s23 = ssub.s32 %s783_s16, %s1133_s20  ;;  %p134_p6 = scmp.eq.s32.totalorder %s850_s18, 1 }
  0x12   : > { %p39_p7 = scmp.eq.s32.totalorder %s38_s23, 0  ;;  %p870_p8 = por %p55_p5, %p54_p3 }
  0x13   : > { %p874_p9 = por %p134_p6, %p48_p1  ;;  %p140_p10 = scmp.eq.s32.totalorder %s499_s19, 1 }
  0x14   : > { %s1109_s24 = scalar_select %p870_p8, 1, 0 }
  0x15   : > { %s1110_s25 = scalar_select %p874_p9, 1, 0 }
  0x16   : > { %s879_s26 = scalar_select %p39_p7, %s775_s14, %s41_s21  }
  0x17   : > { %p881_p11 = por %p140_p10, %p54_p3  ;;  %p555_p13 = scmp.lt.s32.totalorder %s787_s17, 2 }
  0x18   : > { %s888_s28 = sand.u32 1, %s775_s14   ;;  %s529_s30 = sshll.u32 %s783_s16, 6 }
  0x19   : > { %s1111_s27 = scalar_select %p881_p11, 1, 0 }
  0x1a   : > { %s502_s29 = sshll.u32 %s888_s28, 2  ;;  %p894_p0 = pnand %p555_p13, %p862_p4 }
  0x1b   : > { %s181_s5 = sand.u32 1, %s787_s17   ;;  %s1113_s1 = sld [smem:[#allocation14_spill]] }
  0x1c   : > { %s185_s9 = scalar_lea.vmem [#allocation5], %s502_s29  ;;  %s912_s11 = scalar_lea.sflag [#allocation6], %s181_s5 }
  0x1d   : > { %s192_s10 = sshll.u32 %s185_s9, 4  ;;  %p918_p4 = pneg %p894_p0  ;;  %s909_s10 = int_to_ptr.vmem [resolvable:$true] %s192_s10 }
  0x21   : > { %s904_s8 = scalar_lea.hbm %s1113_s1, %s529_s30  ;;  %s616_s6 = scalar_lea.hbm %s1113_s1, 128 }
  0x22   : > { %s611_s19 = scalar_lea.hbm %s904_s8, 64  ;;  %p617_p7 = scmp.lt.u32.totalorder %s904_s8, %s1113_s1 }
  0x23   : > { %p612_p3 = scmp.ne.s32.totalorder %s904_s8, %s611_s19  ;;  %p618_p10 = scmp.lt.u32.totalorder %s616_s6, %s611_s19 }
  0x24   : > { %p620_p12 = scmp.lt.u32.totalorder %s611_s19, %s904_s8 }
  0x25   : > { %p614_p5 = pnand %p918_p4, %p612_p3  ;;  %p619_p13 = por %p618_p10, %p617_p7 }
  0x27   : > { %p615_p6 = pneg %p614_p5  ;;  %p621_p1 = por %p620_p12, %p619_p13 }
  0x29   : > { %p622_p2 = pnand %p621_p1, %p615_p6 }
  0x2b   : > { %625 = shalt.err (!%p622_p2)
}
  0x2c   : > { %s626_s5 = scalar_lea.vmem %s909_s10, 64  ;;  %s789_s22 = smov [#allocation5]  }
  0x2d   : > { %p627_p3 = scmp.ne.s32.totalorder %s909_s10, %s626_s5  ;;  %s631_s23 = sshll.u32 %s789_s22, 4  ;;  %s632_s23 = int_to_ptr.vmem [resolvable:$false] %s631_s23 }
  0x2e   : > { %s633_s7 = scalar_lea.vmem %s632_s23, 128  ;;  %p634_p9 = scmp.lt.s32.totalorder %s909_s10, %s632_s23 }
  0x2f   : > { %p629_p5 = pnand %p627_p3, %p918_p4  ;;  %p635_p8 = scmp.lt.s32.totalorder %s633_s7, %s626_s5 }
  0x31   : > { %p630_p11 = pneg %p629_p5  ;;  %p636_p7 = por %p635_p8, %p634_p9 }
  0x33   : > { %p637_p10 = pnand %p636_p7, %p630_p11 }
  0x35   : > { %640 = shalt.err (!%p637_p10)
}
  0x36   : > { %s1102_s19 = smov 16   ;;  %s1103_s6 = smov 1  }
  0x37   : > { %547 = dma.hbm_to_vmem [thread:$0]  (!%p894_p0), %s904_s8, 64, %s909_s10, %s912_s11, %s1102_s19, %s1102_s19, %s1103_s6  }
  0x38   : > { %p1115_p8 = scmp.lt.s32.totalorder %s787_s17, 3  ;;  %p1116_p9 = scmp.ge.s32.totalorder %s787_s17, 1 }
  0x39   : > { %s1118_s0 = sld [smem:[#allocation13_spill]]  ;;  %s164_s7 = scalar_lea.vmem [#allocation2], %s502_s29 }
  0x3a   : > { %p949_p11 = pnand %p1116_p9, %p1115_p8  ;;  %s171_s1 = sshll.u32 %s164_s7, 4  ;;  %s963_s1 = int_to_ptr.vmem [resolvable:$true] %s171_s1 }
  0x3b   : > { %s508_s8 = sshll.u32 %s888_s28, 3  ;;  %s161_s10 = scalar_lea.sflag [#allocation3], %s888_s28 }
  0x3c   : > { %s1117_s9 = scalar_select %p949_p11, 1, 0 }
  0x3f   : > { %s958_s23 = scalar_lea.hbm %s1118_s0, %s529_s30  ;;  %s646_s30 = scalar_lea.hbm %s1118_s0, 128 }
  0x40   : > { %s641_s19 = scalar_lea.hbm %s958_s23, 64  ;;  %p647_p6 = scmp.lt.u32.totalorder %s958_s23, %s1118_s0 }
  0x41   : > { %p642_p12 = scmp.ne.s32.totalorder %s958_s23, %s641_s19  ;;  %p648_p13 = scmp.lt.u32.totalorder %s646_s30, %s641_s19 }
  0x42   : > { %p650_p5 = scmp.lt.u32.totalorder %s641_s19, %s958_s23 }
  0x43   : > { %p644_p1 = pnand %p642_p12, %p918_p4  ;;  %p649_p3 = por %p648_p13, %p647_p6 }
  0x45   : > { %p645_p2 = pneg %p644_p1  ;;  %p651_p7 = por %p650_p5, %p649_p3 }
  0x47   : > { %p652_p10 = pnand %p651_p7, %p645_p2 }
  0x49   : > { %655 = shalt.err (!%p652_p10)
}
  0x4a   : > { %s656_s29 = scalar_lea.vmem %s963_s1, 64  ;;  %s792_s6 = smov [#allocation2]  }
  0x4b   : > { %p657_p8 = scmp.ne.s32.totalorder %s963_s1, %s656_s29  ;;  %s661_s7 = sshll.u32 %s792_s6, 4  ;;  %s662_s7 = int_to_ptr.vmem [resolvable:$false] %s661_s7 }
  0x4c   : > { %s663_s20 = scalar_lea.vmem %s662_s7, 128  ;;  %p664_p1 = scmp.lt.s32.totalorder %s963_s1, %s662_s7 }
  0x4d   : > { %p659_p9 = pnand %p657_p8, %p918_p4  ;;  %p665_p11 = scmp.lt.s32.totalorder %s663_s20, %s656_s29 }
  0x4f   : > { %p660_p12 = pneg %p659_p9  ;;  %p666_p6 = por %p665_p11, %p664_p1 }
  0x51   : > { %p667_p13 = pnand %p666_p6, %p660_p12 }
  0x53   : > { %670 = shalt.err (!%p667_p13)
}
  0x54   : > { %s1119_s19 = smov 1   ;;  %s1120_s5 = smov 16  }
  0x55   : > { %544 = dma.hbm_to_vmem [thread:$0]  (!%p894_p0), %s958_s23, 64, %s963_s1, %s161_s10, %s1120_s5, %s1120_s5, %s1119_s19  }
  0x56   : > { %s531_s30 = sshll.u32 %s783_s16, 7  ;;  %s206_s22 = scalar_lea.vmem [#allocation7], %s508_s8 }
  0x57   : > { %s214_s29 = sshll.u32 %s206_s22, 4  ;;  %s998_s20 = scalar_lea.hbm %s1098_s2, %s531_s30  ;;  %s1000_s29 = int_to_ptr.vmem [resolvable:$true] %s214_s29 }
  0x58   : > { %s671_s0 = scalar_lea.hbm %s998_s20, 128  ;;  %s676_s23 = scalar_lea.hbm %s1098_s2, 256 }
  0x59   : > { %p672_p11 = scmp.ne.s32.totalorder %s998_s20, %s671_s0  ;;  %p677_p5 = scmp.lt.u32.totalorder %s998_s20, %s1098_s2 }
  0x5a   : > { %p678_p7 = scmp.lt.u32.totalorder %s676_s23, %s671_s0  ;;  %p680_p8 = scmp.lt.u32.totalorder %s671_s0, %s998_s20 }
  0x5b   : > { %p674_p2 = pnand %p672_p11, %p918_p4 }
  0x5c   : > { %p679_p10 = por %p678_p7, %p677_p5 }
  0x5d   : > { %p675_p3 = pneg %p674_p2 }
  0x5e   : > { %p681_p9 = por %p680_p8, %p679_p10 }
  0x60   : > { %p682_p12 = pnand %p681_p9, %p675_p3 }
  0x62   : > { %685 = shalt.err (!%p682_p12)
}
  0x63   : > { %s686_s19 = scalar_lea.vmem %s1000_s29, 128  ;;  %s793_s5 = smov [#allocation7]  }
  0x64   : > { %p687_p1 = scmp.ne.s32.totalorder %s1000_s29, %s686_s19  ;;  %s691_s30 = sshll.u32 %s793_s5, 4  ;;  %s692_s30 = int_to_ptr.vmem [resolvable:$false] %s691_s30 }
  0x65   : > { %s693_s22 = scalar_lea.vmem %s692_s30, 256  ;;  %p694_p11 = scmp.lt.s32.totalorder %s1000_s29, %s692_s30 }
  0x66   : > { %p689_p6 = pnand %p687_p1, %p918_p4  ;;  %p695_p2 = scmp.lt.s32.totalorder %s693_s22, %s686_s19 }
  0x68   : > { %p690_p13 = pneg %p689_p6  ;;  %p696_p5 = por %p695_p2, %p694_p11 }
  0x6a   : > { %p697_p7 = pnand %p696_p5, %p690_p13 }
  0x6c   : > { %700 = shalt.err (!%p697_p7)
}
  0x6d   : > { %s794_s0 = smov 32   ;;  %s795_s6 = smov 2  }
  0x6e   : > { %550 = dma.hbm_to_vmem [thread:$0]  (!%p894_p0), %s998_s20, 128, %s1000_s29, %s912_s11, %s794_s0, %s794_s0, %s795_s6  }
  0x6f   : > { %p1121_p4 = scmp.ne.s32.totalorder %s1117_s9, 0 }
  0x70   : > { %s1027_s21 = sand.u32 (!%p1121_p4), 1, %s771_s13   ;;  %p1122_p3 = scmp.ne.s32.totalorder (!%p1121_p4), %s1109_s24, 0 }
  0x71   : > { %226 = sbr.rel (%p1121_p4) target bundleno = 154 (0x9a), region = 32  ;;  %s512_s7 = sshll.u32 (!%p1121_p4), %s1027_s21, 2 }
  0x72   : > { %s229_s1 = scalar_lea.sflag (!%p1121_p4), [#allocation3], %s1027_s21  ;;  %s232_s28 = scalar_lea.vmem (!%p1121_p4), [#allocation2], %s512_s7 }
  0x78   : > { %754 = dma.done.wait (%p1122_p3), %s229_s1, 64  }
  0x79   : > { %756 = vsyncadd (%p1122_p3), %s229_s1, 4294967232  ;;  %s237_s4 = sand.u32 1, %s850_s18   ;;  %s241_s9 = scalar_lea.vmem [#allocation5], %s512_s7 }
  0x7a   : > { %s238_s11 = scalar_lea.sflag [#allocation6], %s237_s4 }
  0x7b   : > { %758 = dma.done.wait (%p1122_p3), %s238_s11, 192  }
  0x7c   : > { %760 = vsyncadd (%p1122_p3), %s238_s11, 4294967104  ;;  %s514_s29 = sshll.u32 %s1027_s21, 3  ;;  %s532_s8 = sshll.u32 %s779_s15, 7  ;;  %v516_v1 = vld [vmem:[%s232_s28] ss:$0 sm:$0xff] }
  0x7d   : > { %s282_s20 = scalar_lea.vmem [#allocation8], %s514_s29  ;;  %s250_s10 = scalar_lea.vmem [#allocation7], %s514_s29  ;;  %v520_v2 = vld [vmem:[%s241_s9] ss:$0 sm:$0xff]  ;;  %v517_v5 = vld [vmem:[%s232_s28 + $0x1] ss:$0 sm:$0xff] }
  0x7e   : > { %s370_s23 = sshll.u32 %s282_s20, 4  ;;  %v283_v0 = vld [vmem:[%s250_s10] sm:$0x3]  ;;  %v284_v4 = vld [vmem:[%s250_s10 + $0x2] sm:$0x3]  ;;  %s1047_s24 = scalar_lea.hbm %s1099_s3, %s532_s8  ;;  %s1042_s23 = int_to_ptr.vmem [resolvable:$true] %s370_s23 }
  0x7f   : > { %v315_v3 = vmul.f32 %v516_v1, %v283_v0  ;;  %v521_v6 = vld [vmem:[%s241_s9 + $0x1] ss:$0 sm:$0xff]  ;;  %v316_v7 = vmul.f32 %v517_v5, %v284_v4  ;;  %v285_v8 = vld [vmem:[%s250_s10 + $0x4] sm:$0x3]  ;;  %v518_v9 = vld [vmem:[%s232_s28 + $0x2] ss:$0 sm:$0xff] }
  0x80   : > { %v522_v10 = vld [vmem:[%s241_s9 + $0x2] ss:$0 sm:$0xff]  ;;  %v317_v12 = vmul.f32 %v518_v9, %v285_v8  ;;  %v286_v13 = vld [vmem:[%s250_s10 + $0x6] sm:$0x3]  ;;  %v519_v14 = vld [vmem:[%s232_s28 + $0x3] ss:$0 sm:$0xff] }
  0x81   : > { %v347_v11 = vadd.f32 %v520_v2, %v315_v3  ;;  %v523_v15 = vld [vmem:[%s241_s9 + $0x3] ss:$0 sm:$0xff]  ;;  %v348_v16 = vadd.f32 %v521_v6, %v316_v7  ;;  %v318_v17 = vmul.f32 %v519_v14, %v286_v13  ;;  %s356_s19 = scalar_lea.sflag [#allocation4], %s1027_s21  ;;  %s701_s5 = scalar_lea.vmem %s1042_s23, 128 }
  0x82   : > { %v349_v18 = vadd.f32 %v522_v10, %v317_v12  ;;  %p702_p0 = scmp.ne.s32.totalorder %s1042_s23, %s701_s5  ;;  %p1123_p10 = scmp.ne.s32.totalorder %s1110_s25, 0 }
  0x83   : > { %351 = vst [vmem:[%s282_s20] sm:$0x3] %v347_v11  ;;  %352 = vst [vmem:[%s282_s20 + $0x2] sm:$0x3] %v348_v16  ;;  %v350_v19 = vadd.f32 %v523_v15, %v318_v17  ;;  %s796_s30 = smov [#allocation8]  }
  0x84   : > { %353 = vst [vmem:[%s282_s20 + $0x4] sm:$0x3] %v349_v18  ;;  %p703_p8 = pnand %p702_p0, %p1123_p10  ;;  %s705_s22 = sshll.u32 %s796_s30, 4  ;;  %s706_s22 = int_to_ptr.vmem [resolvable:$false] %s705_s22 }
  0x85   : > { %354 = vst [vmem:[%s282_s20 + $0x6] sm:$0x3] %v350_v19  ;;  %s707_s0 = scalar_lea.vmem %s706_s22, 256  ;;  %p708_p12 = scmp.lt.s32.totalorder %s1042_s23, %s706_s22 }
  0x86   : > { %p704_p9 = pneg %p703_p8  ;;  %p709_p1 = scmp.lt.s32.totalorder %s707_s0, %s701_s5 }
  0x88   : > { %p710_p6 = por %p709_p1, %p708_p12 }
  0x8a   : > { %p711_p13 = pnand %p710_p6, %p704_p9 }
  0x8c   : > { %714 = shalt.err (!%p711_p13)
}
  0x8d   : > { %s715_s6 = scalar_lea.hbm %s1047_s24, 128  ;;  %s719_s28 = scalar_lea.hbm %s1099_s3, 256 }
  0x8e   : > { %p716_p11 = scmp.ne.s32.totalorder %s1047_s24, %s715_s6  ;;  %p720_p7 = scmp.lt.u32.totalorder %s1047_s24, %s1099_s3 }
  0x8f   : > { %p721_p4 = scmp.lt.u32.totalorder %s719_s28, %s715_s6  ;;  %p723_p0 = scmp.lt.u32.totalorder %s715_s6, %s1047_s24 }
  0x90   : > { %p717_p2 = pnand %p716_p11, %p1123_p10 }
  0x91   : > { %p722_p3 = por %p721_p4, %p720_p7 }
  0x92   : > { %p718_p5 = pneg %p717_p2 }
  0x93   : > { %p724_p8 = por %p723_p0, %p722_p3 }
  0x95   : > { %p725_p9 = pnand %p724_p8, %p718_p5 }
  0x97   : > { %728 = shalt.err (!%p725_p9)
}
  0x98   : > { %s797_s9 = smov 32   ;;  %s798_s29 = smov 2  }
  0x99   : > { %539 = dma.vmem_to_hbm [thread:$0]  (%p1123_p10), %s1042_s23, 128, %s1047_s24, %s356_s19, %s797_s9, %s797_s9, %s798_s29  }
  0x9a PF: > { %s385_s20 = sand.u32 1, %s767_s12   ;;  %p1124_p12 = scmp.ne.s32.totalorder %s1111_s27, 0 }
  0x9b   : > { %p1125_p1 = scmp.ge.s32.totalorder %s787_s17, 2  ;;  %s386_s8 = scalar_lea.sflag [#allocation4], %s385_s20 }
  0x9d   : > { %p552_p6 = pnand %p1125_p1, %p1124_p12 }
  0x9f   : > { %762 = dma.done.wait (!%p552_p6), %s386_s8, 128  }
  0xa0   : > { %764 = vsyncadd (!%p552_p6), %s386_s8, 4294967168  ;;  %s22_s17 = sadd.s32 1, %s787_s17   ;;  %s1126_s25 = sld [smem:[#allocation12_spill]] }
  0xa1   : > { %p19_p13 = scmp.ge.s32.totalorder %s22_s17, 4   ;;  %s1127_s12 = smov %s771_s13 }
  0xa2   : > { %s1128_s13 = smov %s775_s14  ;;  %s1129_s14 = smov %s879_s26 }
  0xa3   : > { %s1130_s15 = smov %s783_s16  ;;  %21 = sbr.rel (!%p19_p13) target bundleno = 11 (0xb), region = 101 }
  0xa6   : > { %s1131_s16 = smov %s1126_s25 }
  0xaa   :  { %391 = vsyncpa [#allocation3], 1 }
  0xab   :  { %393 = vsyncpa [#allocation3 + $0x1], 1 }
  0xac   :  { %394 = vsyncpa [#allocation6], 1 }
  0xad   :  { %396 = vsyncpa [#allocation6 + $0x1], 1 }
  0xae   :  { %397 = vsyncpa [#allocation4], 1 }
  0xaf   :  { %399 = vsyncpa [#allocation4 + $0x1], 1 }

</bundles_post_ra>
